<compile_context>
chip_gen: v7x
topology: tpu7x:2x2x1
jax: 0.10.0
libtpu: 0.0.40
codegen_flags: <defaults>
</compile_context>

<pallas_src>
import functools
import math

import jax
import jax.numpy as jnp
from jax.experimental import pallas as pl
from jax.experimental.pallas import tpu as pltpu


def _round_up(a, b):
    return ((a + b - 1) // b) * b


def _cdiv(a, b):
    return (a + b - 1) // b


def _zcross_kernel(x_ref, s_ref, o_ref, last_ref, *, inv_softness, post_scale):
    # x_ref: (bm, Tt) samples, s_ref: (Tt, Ft) frame-sum matrix (0.5 / 0),
    # o_ref: (bm, Ft) zero-crossing rate, last_ref: (bm, 1) VMEM carry.
    j = pl.program_id(1)

    # Soft sign (EUP) and one-sample shift (XLU).  No per-lane mask over the
    # (bm, Tt) tile: the roll-wrapped lane-0 value of `d` only ever multiplies
    # the zeroed first row of S.
    t = jnp.tanh(x_ref[...].astype(jnp.float32) * inv_softness)        # (bm, Tt)
    d = jnp.abs(t - pltpu.roll(t, shift=1, axis=1))                    # (bm, Tt)

    # Per-frame sums on the MXU; the 0.5 factor is folded into S.
    z = jnp.dot(d, s_ref[...], preferred_element_type=jnp.float32)     # (bm, Ft)

    # Cross-tile halo: first sample of this time tile vs last sample of the
    # previous tile (VMEM carry).  At j == 0 the reference replicate-pads, so
    # the boundary term is exactly zero -> seed the carry with t[:, 0] itself.
    @pl.when(j == 0)
    def _():
        last_ref[...] = t[:, 0:1]

    corr = 0.5 * jnp.abs(t[:, 0:1] - last_ref[...])                    # (bm, 1)
    f0 = jax.lax.broadcasted_iota(jnp.int32, (1, z.shape[1]), 1) == 0
    z = z + jnp.where(f0, corr, 0.0)                                   # only frame 0

    if post_scale != 1.0:       # static python branch (norm=True only)
        z = z * post_scale

    o_ref[...] = z.astype(o_ref.dtype)
    last_ref[...] = t[:, t.shape[1] - 1:]                              # carry forward


def zero_crossing_analysis(x, frame_length, norm=False, softness=0.001):
    assert frame_length >= 1
    assert softness > 0.0
    L = int(frame_length)
    orig_shape = x.shape
    T = int(orig_shape[-1])
    assert T % L == 0, "T must be a multiple of frame_length"
    NF = T // L

    if not jnp.issubdtype(x.dtype, jnp.floating):
        x = x.astype(jnp.float32)
    out_dtype = x.dtype
    x_bytes = jnp.dtype(x.dtype).itemsize
    out_bytes = jnp.dtype(out_dtype).itemsize

    B = math.prod(orig_shape[:-1]) if orig_shape[:-1] else 1
    x2 = x.reshape(B, T)                     # stream in native dtype

    # ---- generation-aware VMEM policy (64 MiB v7x vs 128 MiB v5e/v6e) -------
    try:
        vmem_phys = int(getattr(pltpu.get_tpu_info(), "vmem_capacity_bytes",
                                64 << 20))
    except Exception:
        vmem_phys = 64 << 20                 # conservative fallback
    budget = min((vmem_phys * 3) // 4, vmem_phys - (32 << 20))
    budget = max(budget, 24 << 20)

    # ---- frame tiling --------------------------------------------------------
    # Ft frames per tile, Tt = Ft * L samples.  Single-tile path uses blocks
    # equal to the full (padded) dims; the multi-tile path keeps Ft a multiple
    # of 128 so every block stays lane-aligned.
    ft_unit = 128 // math.gcd(L, 128)        # min frames so Ft*L % 128 == 0
    ft_single = ft_unit * _cdiv(NF, ft_unit)
    TT_TARGET = 2048

    def _s_bytes(ft):                        # double-buffered f32 S block
        return 2 * (ft * L) * _round_up(ft, 128) * 4

    if ft_single * L <= max(TT_TARGET, 128 * L) and _s_bytes(ft_single) <= budget // 3:
        Ft = ft_single
    else:
        Ft = 128 * max(1, TT_TARGET // (128 * L))
        while Ft > 128 and _s_bytes(Ft) > budget // 3:
            Ft = max(128, ((Ft // 2) // 128) * 128)

    # ---- batch tiling --------------------------------------------------------
    sub = max(8, 32 // x_bytes)              # sublane unit: 8 f32 / 16 bf16 / 32 int8
    bm = min(512, _round_up(B, sub))
    if B > 2 * sub:
        # >= 4 batch-grid blocks (>= 2 per TensorCore on v7x megacore) and a
        # deeper DMA pipeline for small/medium batches.
        bm = min(bm, _round_up(_cdiv(B, 4), sub))

    def _vmem_need(bm_, ft_):
        tt_ = ft_ * L
        ft_lanes = _round_up(ft_, 128)
        return (2 * bm_ * tt_ * x_bytes              # x block, double-buffered
                + 2 * tt_ * ft_lanes * 4             # S block (lane-padded, f32)
                + 2 * bm_ * ft_lanes * out_bytes     # output block (lane-padded)
                + bm_ * 128 * 4                      # carry scratch
                + 4 * bm_ * tt_ * 4)                 # f32 intermediates

    while _vmem_need(bm, Ft) > budget:
        if bm > sub:
            bm = max(sub, ((bm // 2) // sub) * sub)
        elif Ft > 128:
            Ft = max(128, ((Ft // 2) // 128) * 128)
        else:
            break

    Tt = Ft * L
    NF_pad = _round_up(NF, Ft)
    T_pad = NF_pad * L
    B_pad = _round_up(B, bm)
    if B_pad != B or T_pad != T:
        x2 = jnp.pad(x2, ((0, B_pad - B), (0, T_pad - T)))

    # Tile-invariant frame-sum matrix: S[k, f] = 0.5 iff k // L == f and k > 0.
    # Row 0 is zero, so the roll-wrapped lane never reaches the output; the true
    # tile-boundary term comes from the in-kernel VMEM carry.
    k_idx = jnp.arange(Tt)
    S = ((k_idx[:, None] // L) == jnp.arange(Ft)[None, :]) & (k_idx[:, None] > 0)
    S = S.astype(jnp.float32) * 0.5

    grid = (B_pad // bm, NF_pad // Ft)
    post_scale = (1.0 / L) if norm else 1.0

    cost = pl.CostEstimate(
        flops=int(2 * B_pad * T_pad * Ft + 4 * B_pad * T_pad),
        transcendentals=int(B_pad * T_pad),
        bytes_accessed=int(B_pad * T_pad * x_bytes + Tt * Ft * 4
                           + B_pad * NF_pad * out_bytes),
    )

    vmem_limit = int(min(max(_vmem_need(bm, Ft) + (8 << 20), 32 << 20),
                         vmem_phys - (16 << 20)))

    out = pl.pallas_call(
        functools.partial(_zcross_kernel,
                          inv_softness=1.0 / float(softness),
                          post_scale=float(post_scale)),
        out_shape=jax.ShapeDtypeStruct((B_pad, NF_pad), out_dtype),
        grid=grid,
        in_specs=[
            pl.BlockSpec((bm, Tt), lambda i, j: (i, j)),
            pl.BlockSpec((Tt, Ft), lambda i, j: (0, 0)),
        ],
        out_specs=pl.BlockSpec((bm, Ft), lambda i, j: (i, j)),
        scratch_shapes=[pltpu.VMEM((bm, 1), jnp.float32)],
        compiler_params=pltpu.CompilerParams(
            dimension_semantics=("parallel", "arbitrary"),
            vmem_limit_bytes=vmem_limit,
        ),
        cost_estimate=cost,
    )(x2, S)

    out = out[:B, :NF]
    return out.reshape(orig_shape[:-1] + (NF,))


def _reference_zcross(x, frame_length, norm=False, softness=0.001):
    # Pure-JAX reference mirroring the PyTorch code.
    t = jnp.tanh(x / softness)
    t_prev = jnp.concatenate([t[..., :1], t[..., :-1]], axis=-1)
    d = jnp.abs(t - t_prev)
    n = x.shape[-1] // frame_length
    z = 0.5 * d.reshape(x.shape[:-1] + (n, frame_length)).sum(-1)
    if norm:
        z = z / frame_length
    return z


if __name__ == "__main__":
    key = jax.random.PRNGKey(0)
    L = 4

    # Toy waveform batch: (2, 4, 32) -> output (2, 4, 8).
    x = jax.random.normal(key, (2, 4, 32), dtype=jnp.float32)
    z = jax.block_until_ready(zero_crossing_analysis(x, L, norm=False, softness=0.001))
    z_ref = _reference_zcross(x, L, norm=False, softness=0.001)
    assert z.shape == (2, 4, 32 // L)
    assert jnp.allclose(z, z_ref, atol=1e-4, rtol=1e-4)

    zn = jax.block_until_ready(zero_crossing_analysis(x, L, norm=True, softness=0.001))
    zn_ref = _reference_zcross(x, L, norm=True, softness=0.001)
    assert jnp.allclose(zn, zn_ref, atol=1e-4, rtol=1e-4)

    # Longer signal: exercises the 2-D (batch, frame-tile) grid, batch padding
    # and the cross-tile VMEM carry (more than one frame tile).
    x2 = jax.random.normal(jax.random.PRNGKey(0), (3, 4096), dtype=jnp.float32)
    z2 = jax.block_until_ready(zero_crossing_analysis(x2, L, norm=False, softness=0.001))
    z2_ref = _reference_zcross(x2, L, norm=False, softness=0.001)
    assert z2.shape == (3, 4096 // L)
    assert jnp.allclose(z2, z2_ref, atol=1e-4, rtol=1e-4)

    print("KERNEL_OK")
</pallas_src>

<mosaic_0001>
module attributes {stable_mosaic.version = 11 : i64} {
  func.func @_zcross_kernel(%arg0: i32, %arg1: i32, %arg2: memref<8x128xf32, #tpu.memory_space<vmem>>, %arg3: memref<128x32xf32, #tpu.memory_space<vmem>>, %arg4: memref<8x32xf32, #tpu.memory_space<vmem>>, %arg5: memref<8x1xf32, #tpu.memory_space<vmem>>) attributes {dimension_semantics = [#tpu.dimension_semantics<parallel>, #tpu.dimension_semantics<arbitrary>], iteration_bounds = array<i64: 1, 1>, scalar_prefetch = 0 : i64, scratch_operands = 1 : i64, tpu.core_type = #tpu.core_type<tc>, window_params = [{transform_indices = @transform_0, window_bounds = array<i64: 8, 128>}, {pipeline_mode = #tpu.pipeline_mode<synchronous>, transform_indices = @transform_1, window_bounds = array<i64: 128, 32>}, {transform_indices = @transform_2, window_bounds = array<i64: 8, 32>}]} {
    %c0 = arith.constant 0 : index
    %c0_0 = arith.constant 0 : index
    %0 = vector.load %arg2[%c0, %c0_0] : memref<8x128xf32, #tpu.memory_space<vmem>>, vector<8x128xf32>
    %cst = arith.constant 1.000000e+03 : f32
    %1 = vector.broadcast %cst : f32 to vector<8x128xf32>
    %2 = arith.mulf %0, %1 : vector<8x128xf32>
    %3 = math.tanh %2 : vector<8x128xf32>
    %c1_i32 = arith.constant 1 : i32
    %4 = tpu.dynamic_rotate %3 by %c1_i32 dim 1 : vector<8x128xf32>, i32 -> vector<8x128xf32>
    %5 = arith.subf %3, %4 : vector<8x128xf32>
    %6 = math.absf %5 : vector<8x128xf32>
    %c0_1 = arith.constant 0 : index
    %c0_2 = arith.constant 0 : index
    %7 = vector.load %arg3[%c0_1, %c0_2] : memref<128x32xf32, #tpu.memory_space<vmem>>, vector<128x32xf32>
    %cst_3 = arith.constant dense<0.000000e+00> : vector<8x32xf32>
    %8 = tpu.matmul %6, %7, %cst_3 {dimension_numbers = #tpu.dot_dimension_numbers<[1], [0], [0], [1], [0, 0, 1, 1], [], []>} : vector<8x128xf32>, vector<128x32xf32>, vector<8x32xf32> -> vector<8x32xf32>
    %c0_i32 = arith.constant 0 : i32
    %9 = arith.cmpi eq, %arg1, %c0_i32 : i32
    %10 = arith.extui %9 : i1 to i32
    %c0_i32_4 = arith.constant 0 : i32
    %11 = arith.cmpi ne, %10, %c0_i32_4 : i32
    scf.if %11 {
      %31 = vector.extract_strided_slice %3 {offsets = [0, 0], sizes = [8, 1], strides = [1, 1]} : vector<8x128xf32> to vector<8x1xf32>
      %c0_14 = arith.constant 0 : index
      %c0_15 = arith.constant 0 : index
      %32 = vector.load %arg5[%c0_14, %c0_15] : memref<8x1xf32, #tpu.memory_space<vmem>>, vector<8x1xf32>
      tpu.vector_store %arg5[%c0_14, %c0_15], %31 {strides = array<i32>} : memref<8x1xf32, #tpu.memory_space<vmem>>, vector<8x1xf32>,
    } else {
    }
    %12 = vector.extract_strided_slice %3 {offsets = [0, 0], sizes = [8, 1], strides = [1, 1]} : vector<8x128xf32> to vector<8x1xf32>
    %c0_5 = arith.constant 0 : index
    %c0_6 = arith.constant 0 : index
    %13 = vector.load %arg5[%c0_5, %c0_6] : memref<8x1xf32, #tpu.memory_space<vmem>>, vector<8x1xf32>
    %14 = arith.subf %12, %13 : vector<8x1xf32>
    %15 = math.absf %14 : vector<8x1xf32>
    %cst_7 = arith.constant 5.000000e-01 : f32
    %16 = vector.broadcast %cst_7 : f32 to vector<8x1xf32>
    %17 = arith.mulf %16, %15 : vector<8x1xf32>
    %18 = tpu.iota {dimensions = array<i32: 1>} : vector<1x32xi32>
    %c0_i32_8 = arith.constant 0 : i32
    %19 = vector.broadcast %c0_i32_8 : i32 to vector<1x32xi32>
    %20 = arith.cmpi eq, %18, %19 : vector<1x32xi32>
    %cst_9 = arith.constant 0.000000e+00 : f32
    %21 = vector.shape_cast %20 : vector<1x32xi1> to vector<1x32xi1>
    %22 = vector.broadcast %21 : vector<1x32xi1> to vector<8x32xi1>
    %23 = vector.shape_cast %17 : vector<8x1xf32> to vector<8x1xf32>
    %24 = vector.broadcast %23 : vector<8x1xf32> to vector<8x32xf32>
    %25 = vector.broadcast %cst_9 : f32 to vector<8x32xf32>
    %26 = arith.select %22, %24, %25 : vector<8x32xi1>, vector<8x32xf32>
    %27 = arith.addf %8, %26 : vector<8x32xf32>
    %c0_10 = arith.constant 0 : index
    %c0_11 = arith.constant 0 : index
    %28 = vector.load %arg4[%c0_10, %c0_11] : memref<8x32xf32, #tpu.memory_space<vmem>>, vector<8x32xf32>
    tpu.vector_store %arg4[%c0_10, %c0_11], %27 {strides = array<i32>} : memref<8x32xf32, #tpu.memory_space<vmem>>, vector<8x32xf32>,
    %29 = vector.extract_strided_slice %3 {offsets = [0, 127], sizes = [8, 1], strides = [1, 1]} : vector<8x128xf32> to vector<8x1xf32>
    %c0_12 = arith.constant 0 : index
    %c0_13 = arith.constant 0 : index
    %30 = vector.load %arg5[%c0_12, %c0_13] : memref<8x1xf32, #tpu.memory_space<vmem>>, vector<8x1xf32>
    tpu.vector_store %arg5[%c0_12, %c0_13], %29 {strides = array<i32>} : memref<8x1xf32, #tpu.memory_space<vmem>>, vector<8x1xf32>,
    return
  }
  func.func @transform_0(%arg0: i32, %arg1: i32) -> (i32, i32) {
    %c0_i32 = arith.constant 0 : i32
    return %arg0, %arg1 : i32, i32
  }
  func.func @transform_1(%arg0: i32, %arg1: i32) -> (i32, i32) {
    %c0_i32 = arith.constant 0 : i32
    %c0_i32_0 = arith.constant 0 : i32
    %c0_i32_1 = arith.constant 0 : i32
    return %c0_i32, %c0_i32_0 : i32, i32
  }
  func.func @transform_2(%arg0: i32, %arg1: i32) -> (i32, i32) {
    %c0_i32 = arith.constant 0 : i32
    return %arg0, %arg1 : i32, i32
  }
}

</mosaic_0001>

<bundles_post_ra>
// kernel: tpu_custom_call.1
= control target key start
LH: loop header
LB: loop body
LE: loop exit
PB: predicated region body
PF: predicated region fallthrough
CT: control target
= control target key end

     0   :  { %v257_v4 = vmov 0.0|0.0   ;;  %vm258_vm0 = vmmov 0   ;;  %v259_v11 = vmov 0.0   ;;  %s343_s0 = inlined_call_operand.vmem [shape: f32[8,128], index: 0, kind: input, shape index: {}]   ;;  %s344_s1 = inlined_call_operand.vmem [shape: f32[128,32], index: 1, kind: input, shape index: {}]   ;;  %s345_s2 = inlined_call_operand.hbm [shape: f32[8,32], index: 2, kind: output, shape index: {}]  }
   0x1   :  { %v12_v0 = vld [vmem:[%s343_s0] sm:$0xff]  ;;  %v20_v2 = vld [vmem:[%s344_s1 + $0x8] sm:$0xff]  ;;  %200 = vmatprep.subr.bf16.mxu0 %v257_v4  ;;  %v21_v6 = vld [vmem:[%s344_s1 + $0x10] sm:$0xff]  ;;  %197 = vmatprep.mubr.msk.f32.mxu0 %vm258_vm0, %v259_v11 }
   0x2   :  { %v19_v1 = vld [vmem:[%s344_s1] sm:$0xff]  ;;  %v13_v3 = vmul.f32 1000.0, %v12_v0  ;;  %v22_v7 = vld [vmem:[%s344_s1 + $0x18] sm:$0xff]  ;;  %v24_v10 = vld [vmem:[%s344_s1 + $0x28] sm:$0xff] }
   0x3   :  { %v201_v5 = vpack.c.bf16 %v20_v2, %v19_v1  ;;  %v204_v8 = vpack.c.bf16 %v22_v7, %v21_v6  ;;  %v23_v9 = vld [vmem:[%s344_s1 + $0x20] sm:$0xff] }
   0x4   :  { %231 = vtanh.f32 %v13_v3 }
   0x5   :  { %202 = vmatpush3.bf16.msra.mxu0 %v201_v5 }
   0x6   :  { %203 = vmatprep.subr.bf16.mxu0 %v257_v4 }
   0x7   :  { %7 = vsyncpa [#allocation4], 0  ;;  %v260_v12 = vmov 0   ;;  %v207_v13 = vpack.c.bf16 %v24_v10, %v23_v9  ;;  %v25_v14 = vld [vmem:[%s344_s1 + $0x30] sm:$0xff]  ;;  %v26_v15 = vld [vmem:[%s344_s1 + $0x38] sm:$0xff]  ;;  %vm39_vm1 = vcmask 7168   ;;  %v45_v38 = vlaneseq }
   0x8   :  { %230 = vset.pattern.permute.xlu0 %v260_v12  ;;  %v210_v16 = vpack.c.bf16 %v26_v15, %v25_v14  ;;  %v27_v17 = vld [vmem:[%s344_s1 + $0x40] sm:$0xff]  ;;  %v28_v18 = vld [vmem:[%s344_s1 + $0x48] sm:$0xff]  ;;  %s261_s30 = smov 1   ;;  %v29_v21 = vld [vmem:[%s344_s1 + $0x50] sm:$0xff]  ;;  %vm126_vm3 = vcmask 261120  }
   0x9   :  { %205 = vmatpush3.bf16.msra.mxu0 %v204_v8  ;;  %v213_v20 = vpack.c.bf16 %v28_v18, %v27_v17  ;;  %v30_v22 = vld [vmem:[%s344_s1 + $0x58] sm:$0xff]  ;;  %v31_v24 = vld [vmem:[%s344_s1 + $0x60] sm:$0xff]  ;;  %v32_v25 = vld [vmem:[%s344_s1 + $0x68] sm:$0xff]  ;;  %v46_v39 = vand.u32 127, %v45_v38 }
   0xa   :  { %206 = vmatprep.subr.bf16.mxu0 %v257_v4  ;;  %v216_v23 = vpack.c.bf16 %v30_v22, %v29_v21  ;;  %v219_v28 = vpack.c.bf16 %v32_v25, %v31_v24  ;;  %v33_v29 = vld [vmem:[%s344_s1 + $0x70] sm:$0xff]  ;;  %v34_v30 = vld [vmem:[%s344_s1 + $0x78] sm:$0xff]  ;;  %s262_s1 = smov [#allocation3]  }
   0xb   :  { %v222_v33 = vpack.c.bf16 %v34_v30, %v33_v29  ;;  %vm47_vm2 = vcmp.eq.s32.totalorder %v46_v39, 0  ;;  %s140_s15 = sshll.u32 %s262_s1, 4  ;;  %s141_s15 = int_to_ptr.vmem [resolvable:$true] %s140_s15 }
   0xc   :  { %s233_s16 = scalar_lea.vmem %s141_s15, 128  ;;  %p238_p1 = scmp.lt.s32.totalorder %s141_s15, %s141_s15 }
   0xd   :  { %208 = vmatpush3.bf16.msra.mxu0 %v207_v13  ;;  %p234_p0 = scmp.ne.s32.totalorder %s141_s15, %s233_s16  ;;  %p239_p2 = scmp.lt.s32.totalorder %s233_s16, %s233_s16 }
   0xe   :  { %209 = vmatprep.subr.bf16.mxu0 %v257_v4  ;;  %v232_v19 = vpop.eup %231 }
   0xf   :  { %15 = vrot.lane.b32.xlu0 %v232_v19, %s261_s30  ;;  %40 = vst.msk [vmem:[#allocation2] sm:$0xff] %vm39_vm1, %v232_v19  ;;  %129 = vrot.lane.b32.xlu1 %v232_v19, %s261_s30  ;;  %p240_p3 = por %p239_p2, %p238_p1 }
  0x11   :  { %211 = vmatpush3.bf16.msra.mxu0 %v210_v16  ;;  %p241_p4 = pnand %p240_p3, %p234_p0 }
  0x12   :  { %212 = vmatprep.subr.bf16.mxu0 %v257_v4 }
  0x15   :  { %214 = vmatpush3.bf16.msra.mxu0 %v213_v20 }
  0x16   :  { %215 = vmatprep.subr.bf16.mxu0 %v257_v4  ;;  %v41_v26 = vld [vmem:[#allocation2] sm:$0xff] }
  0x17   :  { %v42_v27 = vsub.f32 %v232_v19, %v41_v26 }
  0x19   :  { %217 = vmatpush3.bf16.msra.mxu0 %v216_v23  ;;  %v43_v31 = vand.u32 2147483647, %v42_v27 }
  0x1a   :  { %218 = vmatprep.subr.bf16.mxu0 %v257_v4 }
  0x1b   :  { %v44_v32 = vmul.f32 0.5, %v43_v31 }
  0x1d   :  { %220 = vmatpush3.bf16.msra.mxu0 %v219_v28  ;;  %52 = vperm.xlu0 %230, %v44_v32  }
  0x1e   :  { %221 = vmatprep.subr.bf16.mxu0 %v257_v4 }
  0x21   :  { %223 = vmatpush3.bf16.msra.mxu0 %v222_v33 }
  0x81   :  { %v16_v34 = vpop.permute.xlu0 %15  ;;  %v130_v37 = vpop.permute.xlu1 %129 }
  0x82   :  { %v17_v35 = vsub.f32 %v232_v19, %v16_v34  ;;  %133 = vst.msk [vmem:[#allocation2] sm:$0xff] %vm39_vm1, %v130_v37 }
  0x84   :  { %v18_v36 = vand.u32 2147483647, %v17_v35 }
  0x86   :  { %198 = vmatmul.mubr.f32.vlgmr.msra.gmra.mrb[0].mxu0 %v18_v36 }
  0x9c   :  { %v53_v40 = vpop.permute.xlu0 %52 }
  0x9d   :  { %v55_v41 = vsel %vm47_vm2, %v53_v40, 0.0 }
 0x159   :  { %v122_v42 = vpop.f32.mrb[0].mxu0 }
 0x15a   :  { %v123_v43 = vadd.f32 %v122_v42, %v55_v41  ;;  %v199_v44 = vpop.f32.mrb[1].mxu0 }
 0x15c   :  { %127 = vst.msk [vmem:[#allocation3] sm:$0xff] %vm126_vm3, %v123_v43 }
 0x15d   :  { %244 = shalt.err (!%p241_p4)
}
 0x15e   :  { %s245_s0 = scalar_lea.hbm %s345_s2, 128 }
 0x15f   :  { %p246_p5 = scmp.ne.s32.totalorder %s345_s2, %s245_s0  ;;  %p249_p6 = scmp.lt.u32.totalorder %s245_s0, %s345_s2 }
 0x161   :  { %p251_p7 = pnand %p249_p6, %p246_p5 }
 0x163   :  { %254 = shalt.err (!%p251_p7)
}
 0x164   :  { %143 = dma.vmem_to_hbm [thread:$0]  %s141_s15, 128, %s345_s2, [#allocation4]  }
 0x165   :  { %255 = dma.done.wait [#allocation4], 128  }
 0x166   :  { %256 = vsyncadd [#allocation4], 4294967168 }
 0x167   :  { %147 = vsyncpa [#allocation4], 1 }

</bundles_post_ra>
